<compile_context>
chip_gen: v7x
topology: tpu7x:2x2x1
jax: 0.10.0
libtpu: 0.0.40
codegen_flags: <defaults>
</compile_context>

<pallas_src>
import functools

import jax
import jax.numpy as jnp
from jax import lax
from jax.experimental import pallas as pl
from jax.experimental.pallas import tpu as pltpu


def _logsigmoid(x):
    # Numerically stable log(sigmoid(x)) == torch.nn.functional.logsigmoid
    return jnp.minimum(x, 0.0) - jnp.log1p(jnp.exp(-jnp.abs(x)))


def _skipgram_kernel(TB, K,
                     focus_idx_ref, ctx_idx_ref, neg_idx_ref,   # SMEM (scalar prefetch)
                     focus_w_ref, ctx_w_ref,                    # VMEM-resident tables
                     loss_ref,                                  # (1, 8, 128) per-tile partial
                     f_buf, c_buf, n_buf):                      # VMEM scratch
    i = pl.program_id(0)

    # ---- Fused gather from the VMEM-resident tables. -----------------------
    # Plain dynamic-indexed vector loads/stores (ref[idx] along the first
    # axis); no DMA descriptors, no semaphores, no drain loop.  The K inner
    # loop is a static Python loop (unrolled), so index reads and address math
    # co-issue with the loads.
    @pl.loop(0, TB)
    def _(b):
        row = i * TB + b
        fi = focus_idx_ref[row]
        ci = ctx_idx_ref[row]
        f_buf[b] = focus_w_ref[fi]
        c_buf[b] = ctx_w_ref[ci]
        # Running accumulation over the K negatives (never materialize (K,TB,D)).
        acc = ctx_w_ref[neg_idx_ref[row * K]].astype(jnp.float32)
        for k in range(1, K):
            acc = acc + ctx_w_ref[neg_idx_ref[row * K + k]].astype(jnp.float32)
        n_buf[b] = acc

    # ---- Batched compute (VPU + lane reduce; no MXU needed). ---------------
    f = f_buf[...].astype(jnp.float32)                        # (TB, D)
    c = c_buf[...].astype(jnp.float32)                        # (TB, D)
    n_sum = n_buf[...]                                        # (TB, D) f32

    # posi_score[b] = sum_d f[b,d] * c[b,d]
    posi_score = jnp.sum(f * c, axis=1, keepdims=True)        # (TB, 1)
    posi_predi = _logsigmoid(posi_score)

    # neg_score[b] = sum_k sum_d n[b,k,d] * f[b,d] == sum_d (sum_k n)[b,d]*f[b,d]
    neg_score = jnp.sum(n_sum * f, axis=1, keepdims=True)     # (TB, 1)
    neg_predi = _logsigmoid(neg_score)

    # partial loss for this tile: sum((1 - posi_predi)^2) + sum(neg_predi^2)
    partial = jnp.sum(jnp.square(1.0 - posi_predi) + jnp.square(neg_predi))

    # Lane-dense output tile: partial value at [0,0,0], zeros elsewhere; the
    # wrapper sums all partials.  Each grid step owns a distinct tile, so the
    # batch axis is truly "parallel".
    rr = lax.broadcasted_iota(jnp.int32, (1, 8, 128), 1)
    cc = lax.broadcasted_iota(jnp.int32, (1, 8, 128), 2)
    loss_ref[...] = jnp.where((rr == 0) & (cc == 0), partial, 0.0)


def skipgram_forward(focus_w, ctx_w, focus_idx, context_idx, neg_context_idx,
                     *, block_b=None):
    V, D = focus_w.shape
    assert ctx_w.shape == (V, D)
    B = focus_idx.shape[0]
    K = neg_context_idx.shape[1]

    # Batch tile: fewer, fatter tiles amortize per-grid-step overhead.
    TB = block_b if block_b is not None else min(B, 512)
    assert B % TB == 0, f"batch {B} must be divisible by tile {TB}"
    grid_n = B // TB

    itemsize = jnp.dtype(focus_w.dtype).itemsize
    table_bytes = 2 * V * D * itemsize                       # both tables
    scratch_bytes = 2 * TB * D * itemsize + TB * D * 4       # f/c gather + f32 n_sum
    out_bytes = 2 * 8 * 128 * 4
    vmem_bytes = 2 * table_bytes + scratch_bytes + out_bytes + (4 << 20)
    # TODO(synk): large-vocab path (tables > ~24 MiB) should keep tables in
    # HBM (pl.ANY) with double-buffered per-row DMA gather instead.
    assert vmem_bytes <= 48 * 1024 * 1024, (
        "embedding tables too large for the VMEM-resident gather path")

    kernel = functools.partial(_skipgram_kernel, TB, K)

    partials = pl.pallas_call(
        kernel,
        out_shape=jax.ShapeDtypeStruct((grid_n, 8, 128), jnp.float32),
        grid_spec=pltpu.PrefetchScalarGridSpec(
            num_scalar_prefetch=3,               # focus_idx, context_idx, neg_idx (flat)
            grid=(grid_n,),
            in_specs=[
                pl.BlockSpec((V, D), lambda i, *_: (0, 0)),   # focus table, VMEM-resident
                pl.BlockSpec((V, D), lambda i, *_: (0, 0)),   # context table, VMEM-resident
            ],
            out_specs=pl.BlockSpec((1, 8, 128), lambda i, *_: (i, 0, 0)),
            scratch_shapes=[
                pltpu.VMEM((TB, D), focus_w.dtype),   # gathered focus rows
                pltpu.VMEM((TB, D), ctx_w.dtype),     # gathered context rows
                pltpu.VMEM((TB, D), jnp.float32),     # sum over K of negative rows
            ],
        ),
        compiler_params=pltpu.CompilerParams(
            dimension_semantics=("parallel",),        # distinct output tile per step
            vmem_limit_bytes=int(min(max(vmem_bytes, 32 * 1024 * 1024),
                                     100 * 1024 * 1024)),
        ),
    )(
        focus_idx.astype(jnp.int32),
        context_idx.astype(jnp.int32),
        neg_context_idx.reshape(-1).astype(jnp.int32),   # flat 1D SMEM prefetch
        focus_w,
        ctx_w,
    )
    return jnp.sum(partials)


if __name__ == "__main__":
    vocab_size, embedding_dim = 256, 128
    B, K = 16, 4

    key = jax.random.PRNGKey(0)
    k1, k2, k3, k4, k5 = jax.random.split(key, 5)

    init_range = 0.5 / embedding_dim
    focus_w = jax.random.uniform(k1, (vocab_size, embedding_dim), jnp.float32,
                                 -init_range, init_range)
    # NOTE: the PyTorch module zero-inits context_embedding (uniform_(-0, 0));
    # small random values are used instead so the math path is exercised.
    ctx_w = jax.random.uniform(k2, (vocab_size, embedding_dim), jnp.float32,
                               -init_range, init_range)

    focus_idx = jax.random.randint(k3, (B,), 0, vocab_size, dtype=jnp.int32)
    context_idx = jax.random.randint(k4, (B,), 0, vocab_size, dtype=jnp.int32)
    neg_context_idx = jax.random.randint(k5, (B, K), 0, vocab_size, dtype=jnp.int32)

    # block_b=8 -> grid of 2 tiles, exercising the parallel partial-loss path.
    loss = skipgram_forward(focus_w, ctx_w, focus_idx, context_idx,
                            neg_context_idx, block_b=8)
    jax.block_until_ready(loss)

    # Pure-JAX reference (mirrors the PyTorch forward exactly).
    f = focus_w[focus_idx]
    c = ctx_w[context_idx]
    n = ctx_w[neg_context_idx]
    posi_predi = jax.nn.log_sigmoid(jnp.sum(f * c, axis=1))
    neg_score = jnp.sum(jnp.einsum("bkd,bd->bk", n, f), axis=1)
    neg_predi = jax.nn.log_sigmoid(neg_score)
    ref_loss = jnp.sum(jnp.square(1.0 - posi_predi)) + jnp.sum(jnp.square(neg_predi))

    assert jnp.allclose(loss, ref_loss, rtol=1e-4, atol=1e-4), (loss, ref_loss)
    print("KERNEL_OK")
</pallas_src>

<mosaic_0001>
module attributes {stable_mosaic.version = 11 : i64} {
  func.func @_skipgram_kernel(%arg0: i32, %arg1: memref<16xi32, #tpu.memory_space<smem>>, %arg2: memref<16xi32, #tpu.memory_space<smem>>, %arg3: memref<64xi32, #tpu.memory_space<smem>>, %arg4: memref<256x128xf32, #tpu.memory_space<vmem>>, %arg5: memref<256x128xf32, #tpu.memory_space<vmem>>, %arg6: memref<1x8x128xf32, #tpu.memory_space<vmem>>, %arg7: memref<8x128xf32, #tpu.memory_space<vmem>>, %arg8: memref<8x128xf32, #tpu.memory_space<vmem>>, %arg9: memref<8x128xf32, #tpu.memory_space<vmem>>) attributes {dimension_semantics = [#tpu.dimension_semantics<parallel>], iteration_bounds = array<i64: 2>, scalar_prefetch = 3 : i64, scratch_operands = 3 : i64, tpu.core_type = #tpu.core_type<tc>, window_params = [{pipeline_mode = #tpu.pipeline_mode<synchronous>, transform_indices = @transform_0, window_bounds = array<i64: 256, 128>}, {pipeline_mode = #tpu.pipeline_mode<synchronous>, transform_indices = @transform_1, window_bounds = array<i64: 256, 128>}, {transform_indices = @transform_2, window_bounds = array<i64: 1, 8, 128>}]} {
    %c0_i32 = arith.constant 0 : i32
    %c8_i32 = arith.constant 8 : i32
    %0 = arith.addi %c0_i32, %c8_i32 : i32
    %c1_i32 = arith.constant 1 : i32
    scf.for %arg10 = %c0_i32 to %0 step %c1_i32  : i32 {
      %c1_i32_19 = arith.constant 1 : i32
      %46 = arith.muli %arg10, %c1_i32_19 : i32
      %c0_i32_20 = arith.constant 0 : i32
      %47 = arith.addi %c0_i32_20, %46 : i32
      %c8_i32_21 = arith.constant 8 : i32
      %48 = arith.muli %arg0, %c8_i32_21 : i32
      %49 = arith.addi %48, %47 : i32
      %50 = arith.index_cast %49 : i32 to index
      %51 = memref.load %arg1[%50] : memref<16xi32, #tpu.memory_space<smem>>
      %52 = arith.index_cast %49 : i32 to index
      %53 = memref.load %arg2[%52] : memref<16xi32, #tpu.memory_space<smem>>
      %54 = arith.index_cast %51 : i32 to index
      %c0_22 = arith.constant 0 : index
      %55 = vector.load %arg4[%54, %c0_22] : memref<256x128xf32, #tpu.memory_space<vmem>>, vector<1x128xf32>
      %56 = vector.shape_cast %55 : vector<1x128xf32> to vector<128xf32>
      %57 = arith.index_cast %47 : i32 to index
      %c0_23 = arith.constant 0 : index
      %58 = vector.load %arg7[%57, %c0_23] : memref<8x128xf32, #tpu.memory_space<vmem>>, vector<1x128xf32>
      %59 = vector.shape_cast %58 : vector<1x128xf32> to vector<128xf32>
      %60 = vector.shape_cast %56 : vector<128xf32> to vector<1x128xf32>
      tpu.vector_store %arg7[%57, %c0_23], %60 {strides = array<i32>} : memref<8x128xf32, #tpu.memory_space<vmem>>, vector<1x128xf32>,
      %61 = arith.index_cast %53 : i32 to index
      %c0_24 = arith.constant 0 : index
      %62 = vector.load %arg5[%61, %c0_24] : memref<256x128xf32, #tpu.memory_space<vmem>>, vector<1x128xf32>
      %63 = vector.shape_cast %62 : vector<1x128xf32> to vector<128xf32>
      %64 = arith.index_cast %47 : i32 to index
      %c0_25 = arith.constant 0 : index
      %65 = vector.load %arg8[%64, %c0_25] : memref<8x128xf32, #tpu.memory_space<vmem>>, vector<1x128xf32>
      %66 = vector.shape_cast %65 : vector<1x128xf32> to vector<128xf32>
      %67 = vector.shape_cast %63 : vector<128xf32> to vector<1x128xf32>
      tpu.vector_store %arg8[%64, %c0_25], %67 {strides = array<i32>} : memref<8x128xf32, #tpu.memory_space<vmem>>, vector<1x128xf32>,
      %c4_i32 = arith.constant 4 : i32
      %68 = arith.muli %49, %c4_i32 : i32
      %69 = arith.index_cast %68 : i32 to index
      %70 = memref.load %arg3[%69] : memref<64xi32, #tpu.memory_space<smem>>
      %71 = arith.index_cast %70 : i32 to index
      %c0_26 = arith.constant 0 : index
      %72 = vector.load %arg5[%71, %c0_26] : memref<256x128xf32, #tpu.memory_space<vmem>>, vector<1x128xf32>
      %73 = vector.shape_cast %72 : vector<1x128xf32> to vector<128xf32>
      %c4_i32_27 = arith.constant 4 : i32
      %74 = arith.muli %49, %c4_i32_27 : i32
      %c1_i32_28 = arith.constant 1 : i32
      %75 = arith.addi %74, %c1_i32_28 : i32
      %76 = arith.index_cast %75 : i32 to index
      %77 = memref.load %arg3[%76] : memref<64xi32, #tpu.memory_space<smem>>
      %78 = arith.index_cast %77 : i32 to index
      %c0_29 = arith.constant 0 : index
      %79 = vector.load %arg5[%78, %c0_29] : memref<256x128xf32, #tpu.memory_space<vmem>>, vector<1x128xf32>
      %80 = vector.shape_cast %79 : vector<1x128xf32> to vector<128xf32>
      %81 = arith.addf %73, %80 : vector<128xf32>
      %c4_i32_30 = arith.constant 4 : i32
      %82 = arith.muli %49, %c4_i32_30 : i32
      %c2_i32 = arith.constant 2 : i32
      %83 = arith.addi %82, %c2_i32 : i32
      %84 = arith.index_cast %83 : i32 to index
      %85 = memref.load %arg3[%84] : memref<64xi32, #tpu.memory_space<smem>>
      %86 = arith.index_cast %85 : i32 to index
      %c0_31 = arith.constant 0 : index
      %87 = vector.load %arg5[%86, %c0_31] : memref<256x128xf32, #tpu.memory_space<vmem>>, vector<1x128xf32>
      %88 = vector.shape_cast %87 : vector<1x128xf32> to vector<128xf32>
      %89 = arith.addf %81, %88 : vector<128xf32>
      %c4_i32_32 = arith.constant 4 : i32
      %90 = arith.muli %49, %c4_i32_32 : i32
      %c3_i32 = arith.constant 3 : i32
      %91 = arith.addi %90, %c3_i32 : i32
      %92 = arith.index_cast %91 : i32 to index
      %93 = memref.load %arg3[%92] : memref<64xi32, #tpu.memory_space<smem>>
      %94 = arith.index_cast %93 : i32 to index
      %c0_33 = arith.constant 0 : index
      %95 = vector.load %arg5[%94, %c0_33] : memref<256x128xf32, #tpu.memory_space<vmem>>, vector<1x128xf32>
      %96 = vector.shape_cast %95 : vector<1x128xf32> to vector<128xf32>
      %97 = arith.addf %89, %96 : vector<128xf32>
      %98 = arith.index_cast %47 : i32 to index
      %c0_34 = arith.constant 0 : index
      %99 = vector.load %arg9[%98, %c0_34] : memref<8x128xf32, #tpu.memory_space<vmem>>, vector<1x128xf32>
      %100 = vector.shape_cast %99 : vector<1x128xf32> to vector<128xf32>
      %101 = vector.shape_cast %97 : vector<128xf32> to vector<1x128xf32>
      tpu.vector_store %arg9[%98, %c0_34], %101 {strides = array<i32>} : memref<8x128xf32, #tpu.memory_space<vmem>>, vector<1x128xf32>,
    }
    %c8_i32_0 = arith.constant 8 : i32
    %c0 = arith.constant 0 : index
    %c0_1 = arith.constant 0 : index
    %1 = vector.load %arg7[%c0, %c0_1] : memref<8x128xf32, #tpu.memory_space<vmem>>, vector<8x128xf32>
    %c0_2 = arith.constant 0 : index
    %c0_3 = arith.constant 0 : index
    %2 = vector.load %arg8[%c0_2, %c0_3] : memref<8x128xf32, #tpu.memory_space<vmem>>, vector<8x128xf32>
    %c0_4 = arith.constant 0 : index
    %c0_5 = arith.constant 0 : index
    %3 = vector.load %arg9[%c0_4, %c0_5] : memref<8x128xf32, #tpu.memory_space<vmem>>, vector<8x128xf32>
    %4 = arith.mulf %1, %2 : vector<8x128xf32>
    %cst = arith.constant dense<0.000000e+00> : vector<8xf32>
    %5 = vector.multi_reduction <add>, %4, %cst [1] : vector<8x128xf32> to vector<8xf32>
    %6 = vector.shape_cast %5 : vector<8xf32> to vector<8x1xf32>
    %cst_6 = arith.constant 0.000000e+00 : f32
    %7 = vector.broadcast %cst_6 : f32 to vector<8x1xf32>
    %8 = arith.minimumf %6, %7 : vector<8x1xf32>
    %9 = math.absf %6 : vector<8x1xf32>
    %cst_7 = arith.constant 0.000000e+00 : f32
    %10 = vector.broadcast %cst_7 : f32 to vector<8x1xf32>
    %11 = arith.subf %10, %9 : vector<8x1xf32>
    %12 = math.exp %11 : vector<8x1xf32>
    %13 = math.log1p %12 : vector<8x1xf32>
    %14 = arith.subf %8, %13 : vector<8x1xf32>
    %15 = arith.mulf %3, %1 : vector<8x128xf32>
    %cst_8 = arith.constant dense<0.000000e+00> : vector<8xf32>
    %16 = vector.multi_reduction <add>, %15, %cst_8 [1] : vector<8x128xf32> to vector<8xf32>
    %17 = vector.shape_cast %16 : vector<8xf32> to vector<8x1xf32>
    %cst_9 = arith.constant 0.000000e+00 : f32
    %18 = vector.broadcast %cst_9 : f32 to vector<8x1xf32>
    %19 = arith.minimumf %17, %18 : vector<8x1xf32>
    %20 = math.absf %17 : vector<8x1xf32>
    %cst_10 = arith.constant 0.000000e+00 : f32
    %21 = vector.broadcast %cst_10 : f32 to vector<8x1xf32>
    %22 = arith.subf %21, %20 : vector<8x1xf32>
    %23 = math.exp %22 : vector<8x1xf32>
    %24 = math.log1p %23 : vector<8x1xf32>
    %25 = arith.subf %19, %24 : vector<8x1xf32>
    %cst_11 = arith.constant 1.000000e+00 : f32
    %26 = vector.broadcast %cst_11 : f32 to vector<8x1xf32>
    %27 = arith.subf %26, %14 : vector<8x1xf32>
    %28 = arith.mulf %27, %27 : vector<8x1xf32>
    %29 = arith.mulf %25, %25 : vector<8x1xf32>
    %30 = arith.addf %28, %29 : vector<8x1xf32>
    %31 = vector.shape_cast %30 : vector<8x1xf32> to vector<1x8x1xf32>
    %cst_12 = arith.constant dense<0.000000e+00> : vector<1xf32>
    %32 = vector.multi_reduction <add>, %31, %cst_12 [1, 2] : vector<1x8x1xf32> to vector<1xf32>
    %33 = vector.shape_cast %32 : vector<1xf32> to vector<1x1x1xf32>
    %34 = vector.extract %33[0, 0, 0] : f32 from vector<1x1x1xf32>
    %35 = tpu.iota {dimensions = array<i32: 1>} : vector<1x8x128xi32>
    %36 = tpu.iota {dimensions = array<i32: 2>} : vector<1x8x128xi32>
    %c0_i32_13 = arith.constant 0 : i32
    %37 = vector.broadcast %c0_i32_13 : i32 to vector<1x8x128xi32>
    %38 = arith.cmpi eq, %35, %37 : vector<1x8x128xi32>
    %c0_i32_14 = arith.constant 0 : i32
    %39 = vector.broadcast %c0_i32_14 : i32 to vector<1x8x128xi32>
    %40 = arith.cmpi eq, %36, %39 : vector<1x8x128xi32>
    %41 = arith.andi %38, %40 : vector<1x8x128xi1>
    %cst_15 = arith.constant 0.000000e+00 : f32
    %42 = vector.broadcast %34 : f32 to vector<1x8x128xf32>
    %43 = vector.broadcast %cst_15 : f32 to vector<1x8x128xf32>
    %44 = arith.select %41, %42, %43 : vector<1x8x128xi1>, vector<1x8x128xf32>
    %c0_16 = arith.constant 0 : index
    %c0_17 = arith.constant 0 : index
    %c0_18 = arith.constant 0 : index
    %45 = vector.load %arg6[%c0_16, %c0_17, %c0_18] : memref<1x8x128xf32, #tpu.memory_space<vmem>>, vector<1x8x128xf32>
    tpu.vector_store %arg6[%c0_16, %c0_17, %c0_18], %44 {strides = array<i32>} : memref<1x8x128xf32, #tpu.memory_space<vmem>>, vector<1x8x128xf32>,
    return
  }
  func.func @transform_0(%arg0: i32, %arg1: memref<16xi32, #tpu.memory_space<smem>>, %arg2: memref<16xi32, #tpu.memory_space<smem>>, %arg3: memref<64xi32, #tpu.memory_space<smem>>) -> (i32, i32) {
    %c0_i32 = arith.constant 0 : i32
    %c0_i32_0 = arith.constant 0 : i32
    %c0_i32_1 = arith.constant 0 : i32
    return %c0_i32, %c0_i32_0 : i32, i32
  }
  func.func @transform_1(%arg0: i32, %arg1: memref<16xi32, #tpu.memory_space<smem>>, %arg2: memref<16xi32, #tpu.memory_space<smem>>, %arg3: memref<64xi32, #tpu.memory_space<smem>>) -> (i32, i32) {
    %c0_i32 = arith.constant 0 : i32
    %c0_i32_0 = arith.constant 0 : i32
    %c0_i32_1 = arith.constant 0 : i32
    return %c0_i32, %c0_i32_0 : i32, i32
  }
  func.func @transform_2(%arg0: i32, %arg1: memref<16xi32, #tpu.memory_space<smem>>, %arg2: memref<16xi32, #tpu.memory_space<smem>>, %arg3: memref<64xi32, #tpu.memory_space<smem>>) -> (i32, i32, i32) {
    %c0_i32 = arith.constant 0 : i32
    %c0_i32_0 = arith.constant 0 : i32
    %c0_i32_1 = arith.constant 0 : i32
    return %arg0, %c0_i32, %c0_i32_0 : i32, i32, i32
  }
}

</mosaic_0001>

<bundles_post_ra>
// kernel: tpu_custom_call.1
= control target key start
LH: loop header
LB: loop body
LE: loop exit
PB: predicated region body
PF: predicated region fallthrough
CT: control target
= control target key end

     0   :  { %s883_s0 = inlined_call_operand.hbm [shape: s32[16], index: 0, kind: input, shape index: {}]   ;;  %s884_s3 = inlined_call_operand.hbm [shape: f32[256,128], index: 3, kind: input, shape index: {}]   ;;  %s885_s4 = inlined_call_operand.hbm [shape: f32[256,128], index: 4, kind: input, shape index: {}]   ;;  %s886_s5 = inlined_call_operand.hbm [shape: f32[2,8,128], index: 5, kind: output, shape index: {}]   ;;  %s887_s1 = inlined_call_operand.vmem [shape: s32[16], index: 1, kind: input, shape index: {}]   ;;  %s888_s2 = inlined_call_operand.vmem [shape: s32[64], index: 2, kind: input, shape index: {}]  }
   0x1   :  { %s464_s20 = scalar_lea.hbm %s883_s0, 16 }
   0x2   :  { %p465_p0 = scmp.ne.s32.totalorder %s883_s0, %s464_s20  ;;  %p468_p1 = scmp.lt.u32.totalorder %s464_s20, %s883_s0 }
   0x4   :  { %p470_p2 = pnand %p468_p1, %p465_p0 }
   0x6   :  { %473 = shalt.err (!%p470_p2)  }
   0x7   :  { %s636_s25 = smov [#allocation6]   ;;  %s12_s30 = sshll.u32 %s887_s1, 4  ;;  %s13_s30 = int_to_ptr.vmem [resolvable:$true] %s12_s30 }
   0x8   :  { %11 = dma.hbm_to_smem %s883_s0, 16, %s636_s25, [#allocation5] }
   0x9   :  { %s16_s8 = sshll.u32 %s888_s2, 4  ;;  %s474_s9 = scalar_lea.vmem %s13_s30, 16  ;;  %s17_s8 = int_to_ptr.vmem [resolvable:$true] %s16_s8 }
   0xa   :  { %p475_p3 = scmp.ne.s32.totalorder %s13_s30, %s474_s9  ;;  %p479_p4 = scmp.lt.s32.totalorder %s13_s30, %s13_s30 }
   0xb   :  { %p480_p5 = scmp.lt.s32.totalorder %s474_s9, %s474_s9 }
   0xd   :  { %p481_p6 = por %p480_p5, %p479_p4 }
   0xf   :  { %p482_p7 = pnand %p481_p6, %p475_p3 }
  0x11   :  { %485 = shalt.err (!%p482_p7)  }
  0x12   :  { %s637_s10 = smov [#allocation7]   ;;  %s486_s0 = scalar_lea.vmem %s17_s8, 16 }
  0x13   :  { %15 = dma.vmem_to_smem %s13_s30, 16, %s637_s10, [#allocation5] }
  0x14   :  { %p487_p8 = scmp.ne.s32.totalorder %s17_s8, %s486_s0  ;;  %p491_p9 = scmp.lt.s32.totalorder %s17_s8, %s17_s8 }
  0x15   :  { %p492_p10 = scmp.lt.s32.totalorder %s486_s0, %s486_s0 }
  0x17   :  { %p493_p11 = por %p492_p10, %p491_p9 }
  0x19   :  { %p494_p12 = pnand %p493_p11, %p487_p8 }
  0x1b   :  { %497 = shalt.err (!%p494_p12)  }
  0x1c   :  { %s638_s1 = smov [#allocation8]  }
  0x1d   :  { %19 = dma.vmem_to_smem %s17_s8, 16, %s638_s1, [#allocation5] }
  0x1e   :  { %602 = dma.done.wait [#allocation5], 48 }
  0x1f   :  { %603 = vsyncadd [#allocation5], 4294967248 }
  0x20   :  { %21 = sfence }
  0x21   :  { %22 = vsyncpa [#allocation10], 0 }
  0x22   :  { %23 = vsyncpa [#allocation13], 0 }
  0x23   :  { %24 = vsyncpa [#allocation11], 0 }
  0x24   :  { %26 = vsyncpa [#allocation11 + $0x1], 0  ;;  %s692_s2 = smov 0   ;;  %s694_s11 = smov 0  }
  0x25   :  { %s696_s12 = smov 0   ;;  %s698_s13 = smov 0  }
  0x26 LB: > { %s713_s14 = sadd.s32 4294967295, %s630_s13   ;;  %s367_s15 = sadd.s32 4294967294, %s630_s13   ;;  %s630_s13 = sphi %s698_s13, %s910_s13   ;;  %s626_s12 = sphi %s696_s12, %s909_s12   ;;  %s622_s11 = sphi %s694_s11, %s908_s11   ;;  %s618_s2 = sphi %s692_s2, %s907_s2  }
  0x27   : > { %s717_s16 = sadd.s32 1, %s630_s13   ;;  %s81_s17 = sadd.s32 1, %s626_s12 }
  0x28   : > { %s78_s18 = ssub.s32 %s630_s13, %s717_s16  ;;  %p91_p13 = scmp.ne.s32.totalorder %s626_s12, %s622_s11 }
  0x29   : > { %p79_p0 = scmp.eq.s32.totalorder %s78_s18, 0  ;;  %p92_p1 = scmp.eq.s32.totalorder %s713_s14, 1 }
  0x2a   : > { %p97_p2 = scmp.ne.s32.totalorder %s622_s11, %s618_s2  ;;  %p98_p3 = scmp.eq.s32.totalorder %s367_s15, 1 }
  0x2b   : > { %s728_s19 = scalar_select %p79_p0, %s626_s12, %s81_s17  }
  0x2c   : > { %p730_p4 = por %p92_p1, %p91_p13  ;;  %p734_p5 = por %p98_p3, %p97_p2 }
  0x2d   : > { %p368_p6 = scmp.ge.s32.totalorder %s630_s13, 1  ;;  %p105_p7 = scmp.lt.s32.totalorder %s630_s13, 3 }
  0x2e   : > { %s893_s20 = scalar_select %p730_p4, 1, 0 }
  0x2f   : > { %s894_s21 = scalar_select %p734_p5, 1, 0 }
  0x30   : > { %p889_p8 = scmp.eq.s32.totalorder %s713_s14, 0  ;;  %p741_p9 = pnand %p368_p6, %p105_p7 }
  0x31   : > { %s639_s23 = smov [#allocation9]   ;;  %s640_s26 = smov [#allocation12]  }
  0x32   : > { %s895_s22 = scalar_select %p741_p9, 1, 0 }
  0x33   : > { %s117_s24 = sshll.u32 %s639_s23, 4  ;;  %p393_p10 = pneg %p741_p9  ;;  %s118_s24 = int_to_ptr.vmem [resolvable:$true] %s117_s24 }
  0x34   : > { %s130_s27 = sshll.u32 %s640_s26, 4  ;;  %s498_s30 = scalar_lea.hbm %s884_s3, 4096  ;;  %s753_s27 = int_to_ptr.vmem [resolvable:$true] %s130_s27 }
  0x35   : > { %p749_p11 = pnand %p889_p8, %p393_p10  ;;  %p499_p12 = scmp.ne.s32.totalorder %s884_s3, %s498_s30 }
  0x36   : > { %p505_p2 = scmp.lt.u32.totalorder %s498_s30, %s884_s3 }
  0x37   : > { %p500_p13 = pneg %p749_p11 }
  0x39   : > { %p501_p0 = pnand %p500_p13, %p499_p12 }
  0x3b   : > { %p502_p1 = pneg %p501_p0 }
  0x3d   : > { %p507_p3 = pnand %p505_p2, %p502_p1 }
  0x3f   : > { %510 = shalt.err (!%p507_p3)
}
  0x40   : > { %s511_s10 = scalar_lea.vmem %s118_s24, 4096  ;;  %p519_p8 = scmp.lt.s32.totalorder %s118_s24, %s118_s24 }
  0x41   : > { %p512_p6 = scmp.ne.s32.totalorder %s118_s24, %s511_s10  ;;  %p520_p5 = scmp.lt.s32.totalorder %s511_s10, %s511_s10 }
  0x43   : > { %p514_p7 = pnand %p512_p6, %p500_p13  ;;  %p521_p4 = por %p520_p5, %p519_p8 }
  0x45   : > { %p515_p10 = pneg %p514_p7 }
  0x47   : > { %p522_p9 = pnand %p521_p4, %p515_p10 }
  0x49   : > { %525 = shalt.err (!%p522_p9)
}
  0x4a   : > { %s641_s0 = smov 128   ;;  %s642_s1 = smov 8  }
  0x4b   : > { %396 = dma.hbm_to_vmem [thread:$0]  (!%p749_p11), %s884_s3, 4096, %s118_s24, [#allocation10], %s641_s0, %s641_s0, %s642_s1  }
  0x4c   : > { %s526_s26 = scalar_lea.hbm %s885_s4, 4096 }
  0x4d   : > { %p527_p12 = scmp.ne.s32.totalorder %s885_s4, %s526_s26  ;;  %p533_p8 = scmp.lt.u32.totalorder %s526_s26, %s885_s4 }
  0x4f   : > { %p529_p4 = pnand %p527_p12, %p500_p13 }
  0x51   : > { %p530_p5 = pneg %p529_p4 }
  0x53   : > { %p535_p9 = pnand %p533_p8, %p530_p5 }
  0x55   : > { %538 = shalt.err (!%p535_p9)
}
  0x56   : > { %s539_s24 = scalar_lea.vmem %s753_s27, 4096  ;;  %p547_p3 = scmp.lt.s32.totalorder %s753_s27, %s753_s27 }
  0x57   : > { %p540_p0 = scmp.ne.s32.totalorder %s753_s27, %s539_s24  ;;  %p548_p6 = scmp.lt.s32.totalorder %s539_s24, %s539_s24 }
  0x59   : > { %p542_p1 = pnand %p540_p0, %p500_p13  ;;  %p549_p7 = por %p548_p6, %p547_p3 }
  0x5b   : > { %p543_p2 = pneg %p542_p1 }
  0x5d   : > { %p550_p10 = pnand %p549_p7, %p543_p2 }
  0x5f   : > { %553 = shalt.err (!%p550_p10)
}
  0x60   : > { %399 = dma.hbm_to_vmem [thread:$0]  (!%p749_p11), %s885_s4, 4096, %s753_s27, [#allocation13], %s641_s0, %s641_s0, %s642_s1  }
  0x61   : > { %p897_p12 = scmp.ne.s32.totalorder %s895_s22, 0 }
  0x62   : > { %p898_p4 = scmp.eq.s32.totalorder (!%p897_p12), %s713_s14, 0 }
  0x63   : > { %146 = sbr.rel (%p897_p12) target bundleno = 543 (0x21f), region = 28 }
  0x6a   : > { %605 = dma.done.wait (%p898_p4), [#allocation10], 4096   ;;  %p899_p13 = pmov %p898_p4 }
  0x6b   : > { %p900_p5 = pmov %p898_p4 }
  0x6c   : > { %607 = vsyncadd (%p899_p13), [#allocation10], 4294963200 }
  0x6d   : > { %609 = dma.done.wait (%p900_p5), [#allocation13], 4096   ;;  %p901_p8 = pmov %p898_p4 }
  0x6e   : > { %s892_s25 = sand.u32 1, %s622_s11   ;;  %s818_s9 = smov 0  }
  0x6f   : > { %611 = vsyncadd (%p901_p8), [#allocation13], 4294963200  ;;  %s815_s27 = sshll.u32 %s892_s25, 3 }
  0x70 LB: >> { %s375_s10 = sshll.u32 %s713_s14, 3  ;;  %s179_s7 = scalar_lea.vmem [#allocation2], %s634_s9  ;;  %s634_s9 = sphi %s818_s9, %s172_s9  }
  0x71   : >> { %s174_s0 = sadd.s32 %s634_s9, %s375_s10  ;;  %s183_s25 = scalar_lea.vmem [#allocation3], %s634_s9 }
  0x72   : >> { %s175_s1 = sld [smem:[#allocation6 + %s174_s0]]  ;;  %s376_s15 = sshll.u32 %s174_s0, 2 }
  0x73   : >> { %s176_s17 = sld [smem:[#allocation7 + %s174_s0]]  ;;  %s189_s23 = sadd.s32 1, %s376_s15 }
  0x74   : >> { %s186_s18 = sld [smem:[#allocation8 + %s376_s15]]  ;;  %s194_s28 = sadd.s32 2, %s376_s15 }
  0x75   : >> { %s190_s26 = sld [smem:[#allocation8 + %s189_s23]]  ;;  %s199_s30 = sadd.s32 3, %s376_s15 }
  0x76   : >> { %s195_s29 = sld [smem:[#allocation8 + %s194_s28]] }
  0x77   : >> { %s200_s6 = sld [smem:[#allocation8 + %s199_s30]] }
  0x78   : >> { %s177_s24 = scalar_lea.vmem [#allocation9], %s175_s1  ;;  %s204_s1 = scalar_lea.vmem [#allocation4], %s634_s9 }
  0x79   : >> { %v178_v0 = vld [vmem:[%s177_s24] sm:$0x1]  ;;  %s181_s8 = scalar_lea.vmem [#allocation12], %s176_s17  ;;  %s172_s9 = sadd.s32 1, %s634_s9  }
  0x7a   : >> { %180 = vst [vmem:[%s179_s7] sm:$0x1] %v178_v0  ;;  %v182_v1 = vld [vmem:[%s181_s8] sm:$0x1]  ;;  %s187_s10 = scalar_lea.vmem [#allocation12], %s186_s18  ;;  %p169_p11 = scmp.ge.s32.totalorder %s172_s9, 8  }
  0x7b   : >> { %184 = vst [vmem:[%s183_s25] sm:$0x1] %v182_v1  ;;  %v188_v2 = vld [vmem:[%s187_s10] sm:$0x1]  ;;  %s191_s22 = scalar_lea.vmem [#allocation12], %s190_s26  ;;  %vm249_vm2 = vcmask (%p169_p11), 7168   ;;  %v260_v56 = vlaneseq (%p169_p11)  ;;  %s378_s25 = sshll.u32 (%p169_p11), %s713_s14, 7 }
  0x7c   : >> { %v192_v3 = vld [vmem:[%s191_s22] sm:$0x1]  ;;  %s196_s0 = scalar_lea.vmem [#allocation12], %s195_s29  ;;  %s902_s22 = scalar_lea.vmem (%p169_p11), [#allocation14], %s815_s27 }
  0x7d   : >> { %v193_v4 = vadd.f32 %v192_v3, %v188_v2  ;;  %v197_v5 = vld [vmem:[%s196_s0] sm:$0x1]  ;;  %s201_s23 = scalar_lea.vmem [#allocation12], %s200_s6  ;;  %171 = sbr.rel (!%p169_p11) target bundleno = 112 (0x70), region = 85  ;;  %v261_v57 = vshrl.u32 (%p169_p11), %v260_v56, 7  ;;  %v263_v58 = vand.u32 (%p169_p11), 127, %v260_v56 }
  0x7e   : >> { %v202_v6 = vld [vmem:[%s201_s23] sm:$0x1]  ;;  %s284_s9 = sshll.u32 (%p169_p11), %s902_s22, 4  ;;  %s837_s26 = scalar_lea.hbm (%p169_p11), %s886_s5, %s378_s25  ;;  %s839_s9 = int_to_ptr.vmem [resolvable:$true] %s284_s9 }
  0x7f   : >> { %v198_v7 = vadd.f32 %v197_v5, %v193_v4  ;;  %vm264_vm3 = vcmp.eq.s32.totalorder (%p169_p11), %v261_v57, 0  ;;  %vm265_vm4 = vcmp.eq.s32.totalorder (%p169_p11), %v263_v58, 0  ;;  %s903_s28 = smov (%p169_p11), %s902_s22  ;;  %s904_s29 = sand.u32 (%p169_p11), 1, %s622_s11  }
  0x80   : > { %vm266_vm5 = vmand (%p169_p11), %vm264_vm3, %vm265_vm4  ;;  %s271_s14 = scalar_lea.sflag (%p169_p11), [#allocation11], %s904_s29  ;;  %s554_s30 = scalar_lea.vmem (%p169_p11), %s839_s9, 128 }
  0x81   : >> { %v203_v8 = vadd.f32 %v202_v6, %v198_v7  ;;  %v206_v9 = vld [vmem:[#allocation2] sm:$0xff] (%p169_p11)  ;;  %p555_p9 = scmp.ne.s32.totalorder (%p169_p11), %s839_s9, %s554_s30  ;;  %p905_p0 = scmp.ne.s32.totalorder (%p169_p11), %s893_s20, 0 }
  0x82   : > { %v207_v10 = vld [vmem:[#allocation3] sm:$0xff] (%p169_p11)  ;;  %s643_s6 = smov (%p169_p11), [#allocation14]  }
  0x83   : >> { %205 = vst [vmem:[%s204_s1] sm:$0x1] %v203_v8  ;;  %v209_v12 = vmul.f32 (%p169_p11), %v207_v10, %v206_v9  ;;  %p556_p1 = pnand (%p169_p11), %p555_p9, %p905_p0  ;;  %s558_s24 = sshll.u32 (%p169_p11), %s643_s6, 4  ;;  %s559_s24 = int_to_ptr.vmem [resolvable:$false] %s558_s24 }
  0x84   : > { %s560_s7 = scalar_lea.vmem %s559_s24, 256  ;;  %p561_p3 = scmp.lt.s32.totalorder %s839_s9, %s559_s24 }
  0x85   : > { %210 = vadd.xlane.f32.xlu0 %v209_v12  ;;  %p557_p2 = pneg %p556_p1  ;;  %p562_p6 = scmp.lt.s32.totalorder %s560_s7, %s554_s30 }
  0x87   : > { %p563_p7 = por %p562_p6, %p561_p3 }
  0x89   : > { %p564_p10 = pnand %p563_p7, %p557_p2 }
  0x8a   : > { %v208_v11 = vld [vmem:[#allocation4] sm:$0xff] }
  0x8b   : > { %v227_v13 = vmul.f32 %v208_v11, %v206_v9 }
  0x8d   : > { %228 = vadd.xlane.f32.xlu0 %v227_v13 }
 0x112   : > { %v211_v14 = vpop.xlane.xlu0 %210 }
 0x113   : > { %v213_v15 = vand.u32 2147483647, %v211_v14  ;;  %v212_v34 = vmin.f32 %v211_v14, 0.0 }
 0x115   : > { %v214_v16 = vsub.f32 0.0, %v213_v15 }
 0x117   : > { %v215_v18 = vmul.f32 1.442695, %v214_v16 }
 0x119   : > { %456 = vpow2.f32 %v215_v18 }
 0x11a   : > { %v229_v17 = vpop.xlane.xlu0 %228 }
 0x11b   : > { %v231_v19 = vand.u32 2147483647, %v229_v17  ;;  %v230_v41 = vmin.f32 %v229_v17, 0.0 }
 0x11d   : > { %v232_v20 = vsub.f32 0.0, %v231_v19 }
 0x11f   : > { %v233_v21 = vmul.f32 1.442695, %v232_v20 }
 0x121   : > { %458 = vpow2.f32 %v233_v21 }
 0x123   : > { %v457_v22 = vpop.eup %456 }
 0x124   : > { %v217_v23 = vadd.f32 1.0, %v457_v22  ;;  %v220_v26 = vmul.f32 -0.5, %v457_v22  ;;  %v223_v29 = vand.u32 2147483647, %v457_v22 }
 0x126   : > { %460 = vlog2.f32 %v217_v23  ;;  %v221_v27 = vadd.f32 1.0, %v220_v26  ;;  %vm224_vm0 = vcmp.lt.f32.partialorder %v223_v29, 0.0004427343 }
 0x128   : > { %v222_v32 = vmul.f32 %v457_v22, %v221_v27 }
 0x12b   : > { %v459_v24 = vpop.eup %458 }
 0x12c   : > { %v235_v25 = vadd.f32 1.0, %v459_v24  ;;  %v238_v28 = vmul.f32 -0.5, %v459_v24  ;;  %v241_v35 = vand.u32 2147483647, %v459_v24 }
 0x12e   : > { %462 = vlog2.f32 %v235_v25  ;;  %v239_v33 = vadd.f32 1.0, %v238_v28  ;;  %vm242_vm1 = vcmp.lt.f32.partialorder %v241_v35, 0.0004427343 }
 0x130   : > { %v461_v30 = vpop.eup %460  ;;  %v240_v40 = vmul.f32 %v459_v24, %v239_v33 }
 0x131   : > { %v219_v31 = vmul.f32 0.6931472, %v461_v30 }
 0x133   : > { %v225_v36 = vsel %vm224_vm0, %v222_v32, %v219_v31 }
 0x134   : > { %v226_v38 = vsub.f32 %v212_v34, %v225_v36 }
 0x136   : > { %v245_v42 = vsub.f32 1.0, %v226_v38 }
 0x138   : > { %v463_v37 = vpop.eup %462  ;;  %v246_v46 = vmul.f32 %v245_v42, %v245_v42 }
 0x139   : > { %v237_v39 = vmul.f32 0.6931472, %v463_v37 }
 0x13b   : > { %v243_v43 = vsel %vm242_vm1, %v240_v40, %v237_v39 }
 0x13c   : > { %v244_v44 = vsub.f32 %v230_v41, %v243_v43 }
 0x13e   : > { %v247_v45 = vmul.f32 %v244_v44, %v244_v44 }
 0x140   : > { %v248_v47 = vadd.f32 %v247_v45, %v246_v46 }
 0x142   : > { %v250_v48 = vsel %vm249_vm2, %v248_v47, 0.0 }
 0x143   : > { %251 = vadd.xlane.f32.xlu1 %v250_v48 }
 0x1d0   : > { %v252_v49 = vpop.xlane.xlu1 %251 }
 0x1d1   : > { %v253_v50 = vrot.slane %v252_v49, 4 }
 0x1d3   : > { %v254_v51 = vadd.f32 %v253_v50, %v252_v49 }
 0x1d5   : > { %v255_v52 = vrot.slane %v254_v51, 2 }
 0x1d7   : > { %v256_v53 = vadd.f32 %v255_v52, %v254_v51 }
 0x1d9   : > { %v257_v54 = vrot.slane %v256_v53, 1 }
 0x1db   : > { %v258_v55 = vadd.f32 %v257_v54, %v256_v53 }
 0x1dd   : > { %381 = vpush %v258_v55 }
 0x20e   : > { %s382_s15 = spop %381 }
 0x20f   : > { %v267_v59 = vstv %s382_s15 }
 0x210   : > { %v268_v60 = vsel %vm266_vm5, %v267_v59, 0.0 }
 0x211   : > { %269 = vst [vmem:[%s903_s28] sm:$0xff] %v268_v60 }
 0x212   : > { %567 = shalt.err (!%p564_p10)
}
 0x213   : > { %s568_s27 = scalar_lea.hbm %s837_s26, 128  ;;  %s572_s0 = scalar_lea.hbm %s886_s5, 256 }
 0x214   : > { %p569_p12 = scmp.ne.s32.totalorder %s837_s26, %s568_s27  ;;  %p573_p5 = scmp.lt.u32.totalorder %s837_s26, %s886_s5 }
 0x215   : > { %p574_p8 = scmp.lt.u32.totalorder %s572_s0, %s568_s27  ;;  %p576_p9 = scmp.lt.u32.totalorder %s568_s27, %s837_s26 }
 0x216   : > { %p570_p4 = pnand %p569_p12, %p905_p0 }
 0x217   : > { %p575_p11 = por %p574_p8, %p573_p5 }
 0x218   : > { %p571_p13 = pneg %p570_p4 }
 0x219   : > { %p577_p1 = por %p576_p9, %p575_p11 }
 0x21b   : > { %p578_p2 = pnand %p577_p1, %p571_p13 }
 0x21d   : > { %581 = shalt.err (!%p578_p2)
}
 0x21e   : > { %391 = dma.vmem_to_hbm [thread:$0]  (%p905_p0), %s839_s9, 128, %s837_s26, %s271_s14  }
 0x21f PF: > { %p408_p3 = scmp.ge.s32.totalorder %s630_s13, 2  ;;  %s296_s25 = sand.u32 1, %s618_s2  }
 0x220   : > { %p906_p6 = scmp.ne.s32.totalorder %s894_s21, 0  ;;  %s297_s22 = scalar_lea.sflag [#allocation11], %s296_s25 }
 0x222   : > { %p401_p7 = pnand %p408_p3, %p906_p6 }
 0x224   : > { %613 = dma.done.wait (!%p401_p7), %s297_s22, 128  }
 0x225   : > { %615 = vsyncadd (!%p401_p7), %s297_s22, 4294967168  ;;  %p29_p10 = scmp.ge.s32.totalorder %s717_s16, 4   ;;  %s907_s2 = smov %s622_s11 }
 0x226   : > { %s908_s11 = smov %s626_s12  ;;  %s909_s12 = smov %s728_s19 }
 0x227   : > { %s910_s13 = smov %s717_s16  ;;  %31 = sbr.rel (!%p29_p10) target bundleno = 38 (0x26), region = 96 }
 0x22e   :  { %302 = vsyncpa [#allocation10], 1 }
 0x22f   :  { %304 = vsyncpa [#allocation10 + $0x1], 1 }
 0x230   :  { %305 = vsyncpa [#allocation13], 1 }
 0x231   :  { %306 = vsyncpa [#allocation11], 1 }
 0x232   :  { %308 = vsyncpa [#allocation11 + $0x1], 1 }

</bundles_post_ra>
